<compile_context>
chip_gen: v6e
topology: v6e:2x2x1
jax: 0.10.0
libtpu: 0.0.40
codegen_flags: <defaults>
</compile_context>

<pallas_src>
import functools

import jax
import jax.numpy as jnp
from jax import lax
from jax.experimental import pallas as pl
from jax.experimental.pallas import tpu as pltpu

_LANES = 128
_F32_BYTES = 4
_BLOCK_BYTES = 2 * 1024 * 1024       # per-buffer block budget (f32-width)
_VMEM_LIMIT = 32 * 1024 * 1024


def _min_sublanes(dtype):
    """Native minimum sublane tile for the dtype (8 f32 / 16 bf16 / 32 int8)."""
    return {4: 8, 2: 16, 1: 32}.get(jnp.dtype(dtype).itemsize, 8)


def _round_up(x, m):
    return ((x + m - 1) // m) * m


def _sq_err_elementwise_kernel(p_ref, t_ref, o_ref):
    """Per-tile elementwise squared error (reduction='none')."""
    d = p_ref[...].astype(jnp.float32) - t_ref[...].astype(jnp.float32)
    o_ref[...] = (d * d).astype(o_ref.dtype)


def _sq_err_reduce_kernel(p_ref, t_ref, o_ref, acc_ref, *,
                          block_rows, steps, n_blocks, rows_valid):
    """Elementwise squared error + per-core running sum across the grid.

    Grid is (n_cores, steps).  Logical block index is c*steps + i; when it is
    >= n_blocks (odd split) the index_map clamps to the last real block and
    the whole contribution is masked out here.
    """
    c = pl.program_id(0)
    i = pl.program_id(1)

    @pl.when(i == 0)
    def _():
        acc_ref[...] = jnp.zeros_like(acc_ref)

    d = p_ref[...].astype(jnp.float32) - t_ref[...].astype(jnp.float32)
    sq = d * d

    blk_lin = c * steps + i

    # Fold the (block_rows, 128) block into a fixed (8, 128) partial:
    # leading-axis sum = plain VPU vreg adds; accumulator size stays constant
    # as the block grows.  (Reshape splits the leading dim only -> no relayout.)
    def _fold(x):
        return jnp.sum(x.reshape(-1, 8, _LANES), axis=0)

    @pl.when(blk_lin < n_blocks - 1)
    def _():  # interior blocks: fully valid, no masking work.
        acc_ref[...] += _fold(sq)

    @pl.when(blk_lin >= n_blocks - 1)
    def _():  # last (possibly partial) block, or the clamped OOB duplicate.
        base = jnp.minimum(blk_lin, n_blocks - 1) * block_rows
        row = base + lax.broadcasted_iota(jnp.int32, sq.shape, 0)
        ok = (row < rows_valid) & (blk_lin < n_blocks)
        acc_ref[...] += _fold(jnp.where(ok, sq, 0.0))

    @pl.when(i == pl.num_programs(1) - 1)
    def _():
        o_ref[0, 0] = jnp.sum(acc_ref[...])


def _pack(x, rows):
    """Flatten to a lane-dense (rows, 128) slab; pad only when needed."""
    flat = x.reshape(-1)
    n = flat.shape[0]
    padded = rows * _LANES
    if padded != n:
        # TODO(synk): this <=4 KiB-alignment pad still costs one HBM copy for
        # ragged sizes; removing it entirely needs a manual-DMA 1-D layout.
        flat = jnp.pad(flat, (0, padded - n))
    return flat.reshape(rows, _LANES)


@functools.partial(jax.jit, static_argnames=("reduction", "block_bytes"))
def elementwise_mse_loss(prediction, target, reduction="mean",
                         block_bytes=_BLOCK_BYTES):
    assert prediction.shape == target.shape
    n = prediction.size
    itemsize = jnp.dtype(prediction.dtype).itemsize
    sub = _min_sublanes(prediction.dtype)

    rows_valid = pl.cdiv(n, _LANES)          # rows holding real data
    rows = _round_up(rows_valid, sub)        # array rows (tiny alignment pad)

    # Cap block rows by the f32-widened footprint so in-kernel f32 temporaries
    # stay bounded regardless of the input dtype.
    max_rows = max(sub, (block_bytes // (_LANES * _F32_BYTES)) // sub * sub)
    block_rows = min(max_rows, rows)
    n_blocks = pl.cdiv(rows, block_rows)

    p = _pack(prediction, rows)
    t = _pack(target, rows)

    if reduction == "none":
        tile = pl.BlockSpec((block_rows, _LANES), lambda i: (i, 0))
        out = pl.pallas_call(
            _sq_err_elementwise_kernel,
            out_shape=jax.ShapeDtypeStruct((rows, _LANES), prediction.dtype),
            grid=(n_blocks,),
            in_specs=[tile, tile],
            out_specs=tile,
            compiler_params=pltpu.CompilerParams(
                dimension_semantics=("parallel",),
                vmem_limit_bytes=_VMEM_LIMIT),
            cost_estimate=pl.CostEstimate(
                flops=2 * n, transcendentals=0,
                bytes_accessed=3 * rows * _LANES * itemsize),
        )(p, t)
        flat_out = out.reshape(-1)
        if rows * _LANES != n:
            flat_out = flat_out[:n]
        return flat_out.reshape(prediction.shape)

    if reduction not in ("sum", "mean"):
        raise ValueError(f"unknown reduction: {reduction}")

    # ----- fused reduction ('sum' / 'mean') path ---------------------------
    # Split the block sequence across (up to) two TensorCores; each core
    # produces one f32 partial, summed in the wrapper.  On single-TC parts
    # (v5e/v6e) the second axis-0 step just runs sequentially; thanks to the
    # in-kernel tail mask there is no zero-padding HBM traffic either way.
    n_cores = 2 if n_blocks >= 2 else 1
    steps = pl.cdiv(n_blocks, n_cores)

    def in_map(c, i):
        # Clamp so an odd split never produces an out-of-bounds block index;
        # the kernel masks the clamped duplicate out of the sum.
        return (jnp.minimum(c * steps + i, n_blocks - 1), 0)

    in_spec = pl.BlockSpec((block_rows, _LANES), in_map)
    kernel = functools.partial(
        _sq_err_reduce_kernel, block_rows=block_rows, steps=steps,
        n_blocks=n_blocks, rows_valid=rows_valid)

    partials = pl.pallas_call(
        kernel,
        out_shape=jax.ShapeDtypeStruct((n_cores, 1), jnp.float32),
        grid=(n_cores, steps),
        in_specs=[in_spec, in_spec],
        out_specs=pl.BlockSpec((1, 1), lambda c, i: (c, 0),
                               memory_space=pltpu.SMEM),
        scratch_shapes=[pltpu.VMEM((8, _LANES), jnp.float32)],
        compiler_params=pltpu.CompilerParams(
            # TODO(synk): pltpu.CORE_PARALLEL on axis 0 may map the split onto
            # v7x's two TensorCores more deterministically than "parallel".
            dimension_semantics=("parallel", "arbitrary"),
            vmem_limit_bytes=_VMEM_LIMIT),
        cost_estimate=pl.CostEstimate(
            flops=3 * n, transcendentals=0,
            bytes_accessed=2 * rows * _LANES * itemsize),
    )(p, t)

    total = jnp.sum(partials)
    if reduction == "sum":
        return total.astype(prediction.dtype)
    return (total / jnp.float32(n)).astype(prediction.dtype)


class ElementwiseLoss:
    """JAX/Pallas analog of the PyTorch ElementwiseLoss module."""

    def __init__(self, loss_function=elementwise_mse_loss):
        # The original module builds the per-element loss from a config dict;
        # here it is instantiated deterministically as squared error.
        self.loss_function = loss_function

    def __call__(self, prediction, target, reduction="mean", **kw):
        # The elementwise loss and the reduction are fused inside the kernel.
        return self.loss_function(prediction, target, reduction=reduction, **kw)


if __name__ == "__main__":
    key = jax.random.PRNGKey(0)
    k1, k2 = jax.random.split(key)
    pred = jax.random.normal(k1, (2, 4, 16, 16), dtype=jnp.float32)
    targ = jax.random.normal(k2, (2, 4, 16, 16), dtype=jnp.float32)

    loss_mod = ElementwiseLoss()

    out_mean = jax.block_until_ready(loss_mod(pred, targ, reduction="mean"))
    out_sum = jax.block_until_ready(loss_mod(pred, targ, reduction="sum"))
    out_none = jax.block_until_ready(loss_mod(pred, targ, reduction="none"))

    ref_none = (pred - targ) ** 2
    assert out_none.shape == pred.shape
    assert jnp.allclose(out_none, ref_none, atol=1e-5, rtol=1e-5)
    assert jnp.allclose(out_mean, jnp.mean(ref_none), atol=1e-5, rtol=1e-5)
    assert jnp.allclose(out_sum, jnp.sum(ref_none), atol=1e-4, rtol=1e-5)

    # Ragged shape: exercises the 128-lane alignment pad + in-kernel tail mask.
    k3, k4 = jax.random.split(k2)
    big_p = jax.random.normal(k3, (3, 7, 333), dtype=jnp.float32)
    big_t = jax.random.normal(k4, (3, 7, 333), dtype=jnp.float32)
    big_ref = (big_p - big_t) ** 2
    big_mean = jax.block_until_ready(loss_mod(big_p, big_t, reduction="mean"))
    big_none = jax.block_until_ready(loss_mod(big_p, big_t, reduction="none"))
    assert jnp.allclose(big_none, big_ref, atol=1e-5, rtol=1e-5)
    assert jnp.allclose(big_mean, jnp.mean(big_ref), atol=1e-5, rtol=1e-5)

    # Multi-block / 2-core / odd-block-count / partial-last-block paths,
    # forced with a small block budget (16 rows -> 7 blocks, 2 cores x 4 steps,
    # one clamped OOB-duplicate block fully masked).
    k5, k6 = jax.random.split(k4)
    mb_p = jax.random.normal(k5, (4, 3, 1029), dtype=jnp.float32)
    mb_t = jax.random.normal(k6, (4, 3, 1029), dtype=jnp.float32)
    mb_ref = (mb_p - mb_t) ** 2
    small_blk = 16 * _LANES * _F32_BYTES
    mb_mean = jax.block_until_ready(
        loss_mod(mb_p, mb_t, reduction="mean", block_bytes=small_blk))
    mb_sum = jax.block_until_ready(
        loss_mod(mb_p, mb_t, reduction="sum", block_bytes=small_blk))
    mb_none = jax.block_until_ready(
        loss_mod(mb_p, mb_t, reduction="none", block_bytes=small_blk))
    assert jnp.allclose(mb_none, mb_ref, atol=1e-5, rtol=1e-5)
    assert jnp.allclose(mb_mean, jnp.mean(mb_ref), atol=1e-5, rtol=1e-5)
    assert jnp.allclose(mb_sum, jnp.sum(mb_ref), atol=1e-2, rtol=1e-5)

    # bf16: exercises the dtype-aware (16,128) min tile.
    bp = pred.astype(jnp.bfloat16)
    bt = targ.astype(jnp.bfloat16)
    bref = (bp.astype(jnp.float32) - bt.astype(jnp.float32)) ** 2
    b_mean = jax.block_until_ready(loss_mod(bp, bt, reduction="mean"))
    assert jnp.allclose(jnp.float32(b_mean), jnp.mean(bref),
                        atol=2e-2, rtol=2e-2)

    print("KERNEL_OK")
</pallas_src>

<mosaic_0001>
module attributes {stable_mosaic.version = 11 : i64} {
  func.func @_sq_err_reduce_kernel(%arg0: i32, %arg1: i32, %arg2: memref<16x128xf32, #tpu.memory_space<vmem>>, %arg3: memref<16x128xf32, #tpu.memory_space<vmem>>, %arg4: memref<1x1xf32, #tpu.memory_space<smem>>, %arg5: memref<8x128xf32, #tpu.memory_space<vmem>>) attributes {dimension_semantics = [#tpu.dimension_semantics<parallel>, #tpu.dimension_semantics<arbitrary>], iteration_bounds = array<i64: 1, 1>, scalar_prefetch = 0 : i64, scratch_operands = 1 : i64, tpu.core_type = #tpu.core_type<tc>, window_params = [{transform_indices = @transform_0, window_bounds = array<i64: 16, 128>}, {transform_indices = @transform_1, window_bounds = array<i64: 16, 128>}, {transform_indices = @transform_2, window_bounds = array<i64: 1, 1>}]} {
    %c0_i32 = arith.constant 0 : i32
    %0 = arith.cmpi eq, %arg1, %c0_i32 : i32
    %1 = arith.extui %0 : i1 to i32
    %c0_i32_0 = arith.constant 0 : i32
    %2 = arith.cmpi ne, %1, %c0_i32_0 : i32
    scf.if %2 {
      %cst = arith.constant 0.000000e+00 : f32
      %18 = vector.broadcast %cst : f32 to vector<8x128xf32>
      %c0_10 = arith.constant 0 : index
      %c0_11 = arith.constant 0 : index
      %19 = vector.load %arg5[%c0_10, %c0_11] : memref<8x128xf32, #tpu.memory_space<vmem>>, vector<8x128xf32>
      tpu.vector_store %arg5[%c0_10, %c0_11], %18 {strides = array<i32>} : memref<8x128xf32, #tpu.memory_space<vmem>>, vector<8x128xf32>,
    } else {
    }
    %c0 = arith.constant 0 : index
    %c0_1 = arith.constant 0 : index
    %3 = vector.load %arg2[%c0, %c0_1] : memref<16x128xf32, #tpu.memory_space<vmem>>, vector<16x128xf32>
    %c0_2 = arith.constant 0 : index
    %c0_3 = arith.constant 0 : index
    %4 = vector.load %arg3[%c0_2, %c0_3] : memref<16x128xf32, #tpu.memory_space<vmem>>, vector<16x128xf32>
    %5 = arith.subf %3, %4 : vector<16x128xf32>
    %6 = arith.mulf %5, %5 : vector<16x128xf32>
    %c1_i32 = arith.constant 1 : i32
    %7 = arith.muli %arg0, %c1_i32 : i32
    %8 = arith.addi %7, %arg1 : i32
    %c0_i32_4 = arith.constant 0 : i32
    %9 = arith.cmpi slt, %8, %c0_i32_4 : i32
    %10 = arith.extui %9 : i1 to i32
    %c0_i32_5 = arith.constant 0 : i32
    %11 = arith.cmpi ne, %10, %c0_i32_5 : i32
    scf.if %11 {
      %c0_10 = arith.constant 0 : index
      %c0_11 = arith.constant 0 : index
      %18 = vector.load %arg5[%c0_10, %c0_11] : memref<8x128xf32, #tpu.memory_space<vmem>>, vector<8x128xf32>
      %19 = vector.shape_cast %6 : vector<16x128xf32> to vector<2x8x128xf32>
      %cst = arith.constant dense<0.000000e+00> : vector<8x128xf32>
      %20 = vector.multi_reduction <add>, %19, %cst [0] : vector<2x8x128xf32> to vector<8x128xf32>
      %21 = arith.addf %18, %20 : vector<8x128xf32>
      %c0_12 = arith.constant 0 : index
      %c0_13 = arith.constant 0 : index
      %22 = vector.load %arg5[%c0_12, %c0_13] : memref<8x128xf32, #tpu.memory_space<vmem>>, vector<8x128xf32>
      tpu.vector_store %arg5[%c0_12, %c0_13], %21 {strides = array<i32>} : memref<8x128xf32, #tpu.memory_space<vmem>>, vector<8x128xf32>,
    } else {
    }
    %c0_i32_6 = arith.constant 0 : i32
    %12 = arith.cmpi sge, %8, %c0_i32_6 : i32
    %13 = arith.extui %12 : i1 to i32
    %c0_i32_7 = arith.constant 0 : i32
    %14 = arith.cmpi ne, %13, %c0_i32_7 : i32
    scf.if %14 {
      %c0_i32_10 = arith.constant 0 : i32
      %18 = arith.minsi %8, %c0_i32_10 : i32
      %c16_i32 = arith.constant 16 : i32
      %19 = arith.muli %18, %c16_i32 : i32
      %20 = tpu.iota {dimensions = array<i32: 0>} : vector<16x128xi32>
      %21 = vector.broadcast %19 : i32 to vector<16x128xi32>
      %22 = arith.addi %21, %20 : vector<16x128xi32>
      %c16_i32_11 = arith.constant 16 : i32
      %23 = vector.broadcast %c16_i32_11 : i32 to vector<16x128xi32>
      %24 = arith.cmpi slt, %22, %23 : vector<16x128xi32>
      %c1_i32_12 = arith.constant 1 : i32
      %25 = arith.cmpi slt, %8, %c1_i32_12 : i32
      %26 = vector.broadcast %25 : i1 to vector<16x128xi1>
      %27 = arith.andi %24, %26 : vector<16x128xi1>
      %c0_13 = arith.constant 0 : index
      %c0_14 = arith.constant 0 : index
      %28 = vector.load %arg5[%c0_13, %c0_14] : memref<8x128xf32, #tpu.memory_space<vmem>>, vector<8x128xf32>
      %cst = arith.constant 0.000000e+00 : f32
      %29 = vector.broadcast %cst : f32 to vector<16x128xf32>
      %30 = arith.select %27, %6, %29 : vector<16x128xi1>, vector<16x128xf32>
      %31 = vector.shape_cast %30 : vector<16x128xf32> to vector<2x8x128xf32>
      %cst_15 = arith.constant dense<0.000000e+00> : vector<8x128xf32>
      %32 = vector.multi_reduction <add>, %31, %cst_15 [0] : vector<2x8x128xf32> to vector<8x128xf32>
      %33 = arith.addf %28, %32 : vector<8x128xf32>
      %c0_16 = arith.constant 0 : index
      %c0_17 = arith.constant 0 : index
      %34 = vector.load %arg5[%c0_16, %c0_17] : memref<8x128xf32, #tpu.memory_space<vmem>>, vector<8x128xf32>
      tpu.vector_store %arg5[%c0_16, %c0_17], %33 {strides = array<i32>} : memref<8x128xf32, #tpu.memory_space<vmem>>, vector<8x128xf32>,
    } else {
    }
    %c0_i32_8 = arith.constant 0 : i32
    %15 = arith.cmpi eq, %arg1, %c0_i32_8 : i32
    %16 = arith.extui %15 : i1 to i32
    %c0_i32_9 = arith.constant 0 : i32
    %17 = arith.cmpi ne, %16, %c0_i32_9 : i32
    scf.if %17 {
      %c0_10 = arith.constant 0 : index
      %c0_11 = arith.constant 0 : index
      %18 = vector.load %arg5[%c0_10, %c0_11] : memref<8x128xf32, #tpu.memory_space<vmem>>, vector<8x128xf32>
      %19 = vector.shape_cast %18 : vector<8x128xf32> to vector<1x8x128xf32>
      %cst = arith.constant dense<0.000000e+00> : vector<1xf32>
      %20 = vector.multi_reduction <add>, %19, %cst [1, 2] : vector<1x8x128xf32> to vector<1xf32>
      %21 = vector.shape_cast %20 : vector<1xf32> to vector<1x1x1xf32>
      %22 = vector.extract %21[0, 0, 0] : f32 from vector<1x1x1xf32>
      %c0_12 = arith.constant 0 : index
      %c0_13 = arith.constant 0 : index
      %23 = memref.load %arg4[%c0_12, %c0_13] : memref<1x1xf32, #tpu.memory_space<smem>>
      memref.store %22, %arg4[%c0_12, %c0_13] : memref<1x1xf32, #tpu.memory_space<smem>>
    } else {
    }
    return
  }
  func.func @transform_0(%arg0: i32, %arg1: i32) -> (i32, i32) {
    %c1_i32 = arith.constant 1 : i32
    %0 = arith.muli %arg0, %c1_i32 : i32
    %1 = arith.addi %0, %arg1 : i32
    %c0_i32 = arith.constant 0 : i32
    %2 = arith.minsi %1, %c0_i32 : i32
    %c0_i32_0 = arith.constant 0 : i32
    %c0_i32_1 = arith.constant 0 : i32
    return %2, %c0_i32_0 : i32, i32
  }
  func.func @transform_1(%arg0: i32, %arg1: i32) -> (i32, i32) {
    %c1_i32 = arith.constant 1 : i32
    %0 = arith.muli %arg0, %c1_i32 : i32
    %1 = arith.addi %0, %arg1 : i32
    %c0_i32 = arith.constant 0 : i32
    %2 = arith.minsi %1, %c0_i32 : i32
    %c0_i32_0 = arith.constant 0 : i32
    %c0_i32_1 = arith.constant 0 : i32
    return %2, %c0_i32_0 : i32, i32
  }
  func.func @transform_2(%arg0: i32, %arg1: i32) -> (i32, i32) {
    %c0_i32 = arith.constant 0 : i32
    %c0_i32_0 = arith.constant 0 : i32
    return %arg0, %c0_i32 : i32, i32
  }
}

</mosaic_0001>

<bundles_post_ra>
// kernel: elementwise_mse_loss.1
= control target key start
LH: loop header
LB: loop body
LE: loop exit
PB: predicated region body
PF: predicated region fallthrough
CT: control target
= control target key end

     0   :  { %s209_s0 = inlined_call_operand.vmem [shape: f32[16,128], index: 0, kind: input, shape index: {}]   ;;  %s210_s1 = inlined_call_operand.vmem [shape: f32[16,128], index: 1, kind: input, shape index: {}]   ;;  %s211_s2 = inlined_call_operand.hbm [shape: f32[1,1], index: 2, kind: output, shape index: {}]  }
   0x1   :  { %v81_v0 = vld [vmem:[%s209_s0] sm:$0xff]  ;;  %v82_v1 = vld [vmem:[%s209_s0 + $0x8] sm:$0xff] }
   0x2   :  { %v83_v2 = vld [vmem:[%s210_s1] sm:$0xff]  ;;  %v84_v3 = vld [vmem:[%s210_s1 + $0x8] sm:$0xff] }
   0x3   :  { %v85_v4 = vsub.f32 %v81_v0, %v83_v2 }
   0x4   :  { %7 = vsyncpa [#allocation4], 0  ;;  %v86_v5 = vsub.f32 %v82_v1, %v84_v3  ;;  %s178_s17 = smov [#allocation3]  }
   0x5   :  { %v87_v6 = vmul.f32 %v85_v4, %v85_v4 }
   0x6   :  { %v88_v7 = vmul.f32 %v86_v5, %v86_v5 }
   0x8   :  { %v122_v8 = vadd.f32 %v88_v7, %v87_v6 }
   0xa   :  { %129 = vadd.xlane.f32.xlu0 %v122_v8 }
  0x93   :  { %v130_v9 = vpop.xlane.xlu0 %129 }
  0x94   :  { %v131_v10 = vrot.slane %v130_v9, 4 }
  0x96   :  { %v132_v11 = vadd.f32 %v131_v10, %v130_v9 }
  0x98   :  { %v133_v12 = vrot.slane %v132_v11, 2 }
  0x9a   :  { %v134_v13 = vadd.f32 %v133_v12, %v132_v11 }
  0x9c   :  { %v135_v14 = vrot.slane %v134_v13, 1 }
  0x9e   :  { %v136_v15 = vadd.f32 %v135_v14, %v134_v13 }
  0xa0   :  { %165 = vpush %v136_v15 }
  0xd1   :  { %s166_s0 = spop %165 }
  0xd2   :  { %139 = sst [smem:[#allocation3]] %s166_s0 }
  0xd3   :  { %147 = dma.smem_to_hbm %s178_s17, 16, %s211_s2, [#allocation4]  }
  0xd4   :  { %176 = dma.done.wait [#allocation4], 16  }
  0xd5   :  { %177 = vsyncadd [#allocation4], 4294967280 }
  0xd6   :  { %151 = sfence }
  0xd7   :  { %152 = vsyncpa [#allocation4], 1 }

</bundles_post_ra>
